<compile_context>
chip_gen: v7x
topology: tpu7x:2x2x1
jax: 0.10.0
libtpu: 0.0.40
codegen_flags: <defaults>
</compile_context>

<pallas_src>
import functools

import jax
import jax.numpy as jnp
from jax import lax
from jax.experimental import pallas as pl
from jax.experimental.pallas import tpu as pltpu


def _round_up(n, m):
    return ((n + m - 1) // m) * m


def fm_kernel(w0_ref, x_ref, rhs_ref, colscale_ref, wrow_ref, o_ref):
    # w0_ref      : SMEM (1,)        global bias
    # x_ref       : VMEM [TB, F]     batch tile (bf16 or f32)
    # rhs_ref     : VMEM [F, C]      fused [w1 | v | 0-pad], C = round_up(K+1, 128)
    # colscale_ref: VMEM [2, C]      row 0: linear mask, row 1: 0.5 * square mask
    # wrow_ref    : VMEM [1, C+F]    reduction row: [ones_C | -0.5 * sum_k v^2]
    # o_ref       : VMEM [1, TB]     lane-dense output row for this batch tile
    x = x_ref[...]                                                    # [TB, F]

    # MXU pass 1: col 0 = x @ w1 (first order), cols 1..K = x @ v, pad cols = 0.
    xall = jnp.dot(x, rhs_ref[...],
                   preferred_element_type=jnp.float32)                # [TB, C] f32

    # VPU: d[:, 0] = x@w1 ; d[:, 1..K] = 0.5 * (x@v)^2 ; padded cols stay 0.
    lin = colscale_ref[0:1, :]                                        # [1, C]
    sq = colscale_ref[1:2, :]                                         # [1, C]
    d = xall * (sq * xall + lin)                                      # [TB, C] f32

    # VPU: x^2 in f32 (second-order term is a near-cancelling difference).
    xf = x.astype(jnp.float32)
    t = xf * xf                                                       # [TB, F] f32

    # MXU pass 2: one M=1 contraction producing the lane-major [1, TB] result.
    # Both `cat` segments start at 128-lane boundaries (C % 128 == 0), so the
    # concat needs no cross-lane relayout.  wrow folds the ones-reduction over
    # d and the -0.5 * sum_k v^2 weighting of x^2 into a single weight row.
    cat = jnp.concatenate([d, t], axis=1)                             # [TB, C+F]
    z = lax.dot_general(wrow_ref[...], cat, (((1,), (1,)), ((), ())),
                        preferred_element_type=jnp.float32)           # [1, TB]

    o_ref[...] = jax.nn.sigmoid(z + w0_ref[0]).astype(o_ref.dtype)


def _pick_batch_tile(batch, feature, itemsize):
    """Lane-aligned, F/VMEM-aware batch tile.

    * tiny batches (<= 512 rows after 128-padding): single grid step — the
      ~0.35us per-step overhead outweighs any DMA overlap it would buy,
    * otherwise the largest multiple of 128 <= 2048 such that the
      double-buffered x stream stays within ~16 MiB (safe on v7x's 64 MiB
      VMEM), preferring TB >= 512 (~85% of HBM roofline) and >= 4 grid steps
      (>= 2 per v7x TensorCore) when the batch permits.
    """
    b128 = _round_up(batch, 128)
    if b128 <= 512:
        return b128
    budget = 16 * 1024 * 1024
    tb = min(2048, b128)
    while tb > 128 and 2 * tb * feature * itemsize > budget:
        tb -= 128
    while tb > 512 and -(-b128 // tb) < 4:
        tb -= 128
    return max(tb, 128)


@functools.partial(jax.jit, static_argnames=("batch_tile", "compute_dtype"))
def fm_forward(x, w0, w1, v, *, batch_tile=None, compute_dtype=jnp.bfloat16):
    B, F = x.shape
    K = v.shape[1]
    C = _round_up(K + 1, 128)                 # lane-padded column count of [w1|v]

    itemsize = jnp.dtype(compute_dtype).itemsize
    TB = _pick_batch_tile(B, F, itemsize) if batch_tile is None else batch_tile
    assert TB % 128 == 0, "batch tile must be a multiple of 128"
    B_pad = _round_up(max(B, TB), TB)         # pad batch with zero rows
    grid = B_pad // TB

    # Stream x in the compute dtype (HBM-bound kernel; accumulation stays f32).
    # In a real pipeline x would already arrive bf16 / the cast fuses upstream.
    x_c = x.astype(compute_dtype)
    if B_pad != B:
        x_c = jnp.pad(x_c, ((0, B_pad - B), (0, 0)))

    # ---- Grid-invariant weight prep (once in the wrapper, not per tile) ----
    rhs = jnp.zeros((F, C), dtype=compute_dtype)
    rhs = rhs.at[:, 0:1].set(w1.astype(compute_dtype))
    rhs = rhs.at[:, 1:K + 1].set(v.astype(compute_dtype))

    col = jnp.arange(C)
    lin_row = (col == 0).astype(jnp.float32)
    sq_row = 0.5 * ((col >= 1) & (col <= K)).astype(jnp.float32)
    colscale = jnp.stack([lin_row, sq_row], axis=0)                   # [2, C]

    # sum_k v^2 from the *cast* v so both halves of the near-cancelling
    # second-order term see the same truncation.
    v_c = v.astype(compute_dtype).astype(jnp.float32)
    s = jnp.sum(v_c * v_c, axis=1)                                    # [F]
    wrow = jnp.concatenate([jnp.ones((C,), jnp.float32),
                            -0.5 * s])[None, :]                       # [1, C+F]

    w0 = w0.reshape((1,)).astype(jnp.float32)

    # VMEM sizing: double-buffered x tile + grid-invariant weights + f32
    # intermediates (xall, d, t, cat) + the small lane-dense output row.
    vmem_bytes = (2 * TB * F * itemsize
                  + 2 * F * C * itemsize
                  + TB * (3 * C + 2 * F) * 4
                  + 2 * 2 * TB * 4
                  + (3 * C + F) * 4)
    vmem_limit = int(min(100 * 1024 * 1024,
                         max(32 * 1024 * 1024, 2 * vmem_bytes)))

    cost = pl.CostEstimate(
        flops=2 * B_pad * F * C + 2 * B_pad * (C + F) + 4 * B_pad * C,
        transcendentals=B_pad,
        bytes_accessed=B_pad * F * itemsize + F * C * itemsize + 4 * B_pad)

    # TODO(synk): for very large F, add a second "arbitrary" grid axis over F
    # with an f32 scratch accumulator (zero at k==0, sigmoid+store at last k)
    # so the (TB, F) x block no longer caps the tile size on v7x's 64 MiB VMEM.
    out_row = pl.pallas_call(
        fm_kernel,
        out_shape=jax.ShapeDtypeStruct((1, B_pad), jnp.float32),
        grid=(grid,),
        in_specs=[
            pl.BlockSpec(memory_space=pltpu.MemorySpace.SMEM),        # w0 scalar
            pl.BlockSpec((TB, F), lambda i: (i, 0)),                  # x batch tile
            pl.BlockSpec((F, C), lambda i: (0, 0)),                   # [w1|v|0]
            pl.BlockSpec((2, C), lambda i: (0, 0)),                   # masks
            pl.BlockSpec((1, C + F), lambda i: (0, 0)),               # reduction row
        ],
        out_specs=pl.BlockSpec((1, TB), lambda i: (0, i)),            # lane-dense
        compiler_params=pltpu.CompilerParams(
            dimension_semantics=("parallel",),
            vmem_limit_bytes=vmem_limit),
        cost_estimate=cost,
    )(w0, x_c, rhs, colscale, wrow)

    return out_row[0, :B].reshape(B, 1)


def fm_reference(x, w0, w1, v):
    first = x @ w1
    sq_of_sum = (x @ v) ** 2
    sum_of_sq = (x ** 2) @ (v ** 2)
    second = 0.5 * jnp.sum(sq_of_sum - sum_of_sq, axis=1, keepdims=True)
    return jax.nn.sigmoid(w0 + first + second)


if __name__ == "__main__":
    batch, feature_size, k = 256, 64, 16

    key = jax.random.PRNGKey(0)
    kx, kw1, kv = jax.random.split(key, 3)

    # Deterministic parameter init mirroring the PyTorch __init__.
    w0 = jnp.zeros((1,), dtype=jnp.float32)
    w1 = 0.01 * jax.random.normal(kw1, (feature_size, 1), dtype=jnp.float32)
    v = 0.01 * jax.random.normal(kv, (feature_size, k), dtype=jnp.float32)

    x = jax.random.normal(kx, (batch, feature_size), dtype=jnp.float32)

    out = fm_forward(x, w0, w1, v)     # B=256 -> TB=256, single-step grid
    out = jax.block_until_ready(out)

    ref = fm_reference(x, w0, w1, v)
    assert out.shape == (batch, 1)
    # Tolerance covers bf16 streaming of x / [w1|v] and the default-precision
    # MXU passes (the f32 reference also truncates operands to bf16 on the MXU).
    assert jnp.allclose(out, ref, atol=2e-3, rtol=2e-3), \
        float(jnp.max(jnp.abs(out - ref)))

    print("KERNEL_OK")
</pallas_src>

<mosaic_0001>
module attributes {stable_mosaic.version = 11 : i64} {
  func.func @fm_kernel(%arg0: i32, %arg1: memref<1xf32, #tpu.memory_space<smem>>, %arg2: memref<256x64xbf16, #tpu.memory_space<vmem>>, %arg3: memref<64x128xbf16, #tpu.memory_space<vmem>>, %arg4: memref<2x128xf32, #tpu.memory_space<vmem>>, %arg5: memref<1x192xf32, #tpu.memory_space<vmem>>, %arg6: memref<1x256xf32, #tpu.memory_space<vmem>>) attributes {dimension_semantics = [#tpu.dimension_semantics<parallel>], iteration_bounds = array<i64: 1>, scalar_prefetch = 0 : i64, scratch_operands = 0 : i64, tpu.core_type = #tpu.core_type<tc>, window_params = [{transform_indices = @transform_0, window_bounds = array<i64: 1>}, {transform_indices = @transform_1, window_bounds = array<i64: 256, 64>}, {pipeline_mode = #tpu.pipeline_mode<synchronous>, transform_indices = @transform_2, window_bounds = array<i64: 64, 128>}, {pipeline_mode = #tpu.pipeline_mode<synchronous>, transform_indices = @transform_3, window_bounds = array<i64: 2, 128>}, {pipeline_mode = #tpu.pipeline_mode<synchronous>, transform_indices = @transform_4, window_bounds = array<i64: 1, 192>}, {transform_indices = @transform_5, window_bounds = array<i64: 1, 256>}]} {
    %c0 = arith.constant 0 : index
    %c0_0 = arith.constant 0 : index
    %0 = vector.load %arg2[%c0, %c0_0] : memref<256x64xbf16, #tpu.memory_space<vmem>>, vector<256x64xbf16>
    %c0_1 = arith.constant 0 : index
    %c0_2 = arith.constant 0 : index
    %1 = vector.load %arg3[%c0_1, %c0_2] : memref<64x128xbf16, #tpu.memory_space<vmem>>, vector<64x128xbf16>
    %cst = arith.constant dense<0.000000e+00> : vector<256x128xf32>
    %2 = tpu.matmul %0, %1, %cst {dimension_numbers = #tpu.dot_dimension_numbers<[1], [0], [0], [1], [0, 0, 1, 1], [], []>} : vector<256x64xbf16>, vector<64x128xbf16>, vector<256x128xf32> -> vector<256x128xf32>
    %c0_3 = arith.constant 0 : index
    %c0_4 = arith.constant 0 : index
    %3 = vector.load %arg4[%c0_3, %c0_4] : memref<2x128xf32, #tpu.memory_space<vmem>>, vector<1x128xf32>
    %c1 = arith.constant 1 : index
    %c0_5 = arith.constant 0 : index
    %4 = vector.load %arg4[%c1, %c0_5] : memref<2x128xf32, #tpu.memory_space<vmem>>, vector<1x128xf32>
    %5 = vector.broadcast %4 : vector<1x128xf32> to vector<256x128xf32>
    %6 = arith.mulf %5, %2 : vector<256x128xf32>
    %7 = vector.broadcast %3 : vector<1x128xf32> to vector<256x128xf32>
    %8 = arith.addf %6, %7 : vector<256x128xf32>
    %9 = arith.mulf %2, %8 : vector<256x128xf32>
    %10 = arith.extf %0 : vector<256x64xbf16> to vector<256x64xf32>
    %11 = arith.mulf %10, %10 : vector<256x64xf32>
    %12 = tpu.concatenate %9, %11 in 1 : vector<256x128xf32>, vector<256x64xf32> -> vector<256x192xf32>
    %c0_6 = arith.constant 0 : index
    %c0_7 = arith.constant 0 : index
    %13 = vector.load %arg5[%c0_6, %c0_7] : memref<1x192xf32, #tpu.memory_space<vmem>>, vector<1x192xf32>
    %cst_8 = arith.constant dense<0.000000e+00> : vector<1x256xf32>
    %14 = tpu.matmul %13, %12, %cst_8 {dimension_numbers = #tpu.dot_dimension_numbers<[1], [1], [0], [0], [0, 0, 1, 0], [], []>} : vector<1x192xf32>, vector<256x192xf32>, vector<1x256xf32> -> vector<1x256xf32>
    %c0_9 = arith.constant 0 : index
    %15 = memref.load %arg1[%c0_9] : memref<1xf32, #tpu.memory_space<smem>>
    %16 = vector.broadcast %15 : f32 to vector<1x256xf32>
    %17 = arith.addf %14, %16 : vector<1x256xf32>
    %18 = arith.negf %17 : vector<1x256xf32>
    %19 = math.exp %18 : vector<1x256xf32>
    %cst_10 = arith.constant 1.000000e+00 : f32
    %20 = vector.broadcast %cst_10 : f32 to vector<1x256xf32>
    %21 = arith.addf %20, %19 : vector<1x256xf32>
    %22 = arith.divf %20, %21 : vector<1x256xf32>
    %c0_11 = arith.constant 0 : index
    %c0_12 = arith.constant 0 : index
    %23 = vector.load %arg6[%c0_11, %c0_12] : memref<1x256xf32, #tpu.memory_space<vmem>>, vector<1x256xf32>
    tpu.vector_store %arg6[%c0_11, %c0_12], %22 {strides = array<i32>} : memref<1x256xf32, #tpu.memory_space<vmem>>, vector<1x256xf32>,
    return
  }
  func.func @transform_0(%arg0: i32) -> i32 {
    %c0_i32 = arith.constant 0 : i32
    %c0_i32_0 = arith.constant 0 : i32
    return %c0_i32 : i32
  }
  func.func @transform_1(%arg0: i32) -> (i32, i32) {
    %c0_i32 = arith.constant 0 : i32
    %c0_i32_0 = arith.constant 0 : i32
    return %arg0, %c0_i32 : i32, i32
  }
  func.func @transform_2(%arg0: i32) -> (i32, i32) {
    %c0_i32 = arith.constant 0 : i32
    %c0_i32_0 = arith.constant 0 : i32
    %c0_i32_1 = arith.constant 0 : i32
    return %c0_i32, %c0_i32_0 : i32, i32
  }
  func.func @transform_3(%arg0: i32) -> (i32, i32) {
    %c0_i32 = arith.constant 0 : i32
    %c0_i32_0 = arith.constant 0 : i32
    %c0_i32_1 = arith.constant 0 : i32
    return %c0_i32, %c0_i32_0 : i32, i32
  }
  func.func @transform_4(%arg0: i32) -> (i32, i32) {
    %c0_i32 = arith.constant 0 : i32
    %c0_i32_0 = arith.constant 0 : i32
    %c0_i32_1 = arith.constant 0 : i32
    return %c0_i32, %c0_i32_0 : i32, i32
  }
  func.func @transform_5(%arg0: i32) -> (i32, i32) {
    %c0_i32 = arith.constant 0 : i32
    %c0_i32_0 = arith.constant 0 : i32
    return %c0_i32, %arg0 : i32, i32
  }
}

</mosaic_0001>

<bundles_post_ra>
// kernel: fm_forward.1
= control target key start
LH: loop header
LB: loop body
LE: loop exit
PB: predicated region body
PF: predicated region fallthrough
CT: control target
= control target key end

     0   :  { %vm167_vm0 = vcmask 523264   ;;  %s1471_s0 = inlined_call_operand.<no memory space> [shape: f32[1], index: 0, kind: input, shape index: {}]   ;;  %s1472_s1 = inlined_call_operand.vmem [shape: bf16[256,64], index: 1, kind: input, shape index: {}]   ;;  %s1473_s2 = inlined_call_operand.vmem [shape: bf16[64,128], index: 2, kind: input, shape index: {}]   ;;  %s1474_s3 = inlined_call_operand.vmem [shape: f32[2,128], index: 3, kind: input, shape index: {}]   ;;  %s1475_s4 = inlined_call_operand.vmem [shape: f32[1,192], index: 4, kind: input, shape index: {}]   ;;  %s1476_s5 = inlined_call_operand.hbm [shape: f32[1,256], index: 5, kind: output, shape index: {}]  }
   0x1   :  { %v993_v0 = vld [vmem:[%s1473_s2] sm:$0xff]   ;;  %v994_v1 = vld [vmem:[%s1473_s2 + $0x8] sm:$0xff]   ;;  %v995_v2 = vld [vmem:[%s1473_s2 + $0x10] sm:$0xff]  }
   0x2   :  { %871 = vmatprep.subr.bf16.mxu0 %v993_v0  ;;  %v23_v3 = vld [vmem:[%s1472_s1] sm:$0xff]   ;;  %v996_v4 = vld [vmem:[%s1473_s2 + $0x18] sm:$0xff]  }
   0x3   :  { %872 = vmatpush3.bf16.msra.mxu0 %v993_v0  ;;  %879 = vmatprep.mubr.msk.bf16.mxu0 %vm167_vm0, %v23_v3 }
   0x4   :  { %873 = vmatprep.subr.bf16.mxu0 %v994_v1 }
   0x7   :  { %874 = vmatpush3.bf16.msra.mxu0 %v994_v1 }
   0x8   :  { %875 = vmatprep.subr.bf16.mxu0 %v995_v2 }
   0x9   :  { %11 = vsyncpa [#allocation4], 0  ;;  %v25_v5 = vld [vmem:[%s1472_s1 + $0x8] sm:$0xff]   ;;  %v1115_v6 = vld [vmem:[%s1472_s1 + $0x10] sm:$0xff]   ;;  %v483_v20 = vunpack.c.l.bf16 %v23_v3  ;;  %v484_v21 = vunpack.c.h.bf16 %v23_v3  ;;  %v551_v35 = vlaneseq }
   0xa   :  { %v1123_v7 = vld [vmem:[%s1472_s1 + $0x18] sm:$0xff]   ;;  %v1128_v8 = vld [vmem:[%s1472_s1 + $0x20] sm:$0xff]   ;;  %v1137_v9 = vld [vmem:[%s1472_s1 + $0x28] sm:$0xff]   ;;  %v485_v29 = vunpack.c.l.bf16 %v25_v5  ;;  %v486_v30 = vunpack.c.h.bf16 %v25_v5  ;;  %v487_v50 = vunpack.c.l.bf16 %v1115_v6  ;;  %v488_v55 = vunpack.c.h.bf16 %v1115_v6 }
   0xb   :  { %876 = vmatpush3.bf16.msra.mxu0 %v995_v2  ;;  %v1142_v10 = vld [vmem:[%s1472_s1 + $0x30] sm:$0xff]   ;;  %v1151_v11 = vld [vmem:[%s1472_s1 + $0x38] sm:$0xff]   ;;  %v1156_v12 = vld [vmem:[%s1472_s1 + $0x40] sm:$0xff]   ;;  %v515_v22 = vmul.f32 %v483_v20, %v483_v20  ;;  %v516_v23 = vmul.f32 %v484_v21, %v484_v21  ;;  %v1236_v41 = vshrl.u32 %v551_v35, 7  ;;  %vm761_vm2 = vcmp.lt.s32.totalorder %v551_v35, 256 }
   0xc   :  { %877 = vmatprep.subr.bf16.mxu0 %v996_v4  ;;  %v1165_v13 = vld [vmem:[%s1472_s1 + $0x48] sm:$0xff]   ;;  %v1170_v14 = vld [vmem:[%s1472_s1 + $0x50] sm:$0xff]   ;;  %v1179_v15 = vld [vmem:[%s1472_s1 + $0x58] sm:$0xff]   ;;  %v517_v43 = vmul.f32 %v485_v29, %v485_v29  ;;  %v518_v44 = vmul.f32 %v486_v30, %v486_v30  ;;  %v520_v20 = vmul.f32 %v488_v55, %v488_v55  ;;  %v490_v30 = vunpack.c.h.bf16 %v1123_v7 }
   0xd   :  { %v1184_v16 = vld [vmem:[%s1472_s1 + $0x60] sm:$0xff]   ;;  %v1193_v17 = vld [vmem:[%s1472_s1 + $0x68] sm:$0xff]   ;;  %v1198_v18 = vld [vmem:[%s1472_s1 + $0x70] sm:$0xff]   ;;  %v911_v24 = vpack.c.bf16 %v516_v23, %v515_v22  ;;  %v557_v47 = vsub.s32 1, %v1236_v41  ;;  %v492_v55 = vunpack.c.h.bf16 %v1128_v8 }
   0xe   :  { %v1207_v19 = vld [vmem:[%s1472_s1 + $0x78] sm:$0xff]   ;;  %vm1213_vm1 = vmpackc.low %vm167_vm0, %vm167_vm0  ;;  %v1222_v26 = vld [vmem:[%s1474_s3 + $0x1] ss:$0 sm:$0xff]  ;;  %v916_v59 = vpack.c.bf16 %v518_v44, %v517_v43 }
   0xf   :  { %878 = vmatpush3.bf16.msra.mxu0 %v996_v4  ;;  %913 = vmatprep.subr.msk.bf16.mxu1 %vm1213_vm1, %v911_v24  ;;  %v1227_v28 = vld [vmem:[%s1474_s3] ss:$0 sm:$0xff]  ;;  %v489_v24 = vunpack.c.l.bf16 %v1123_v7 }
  0x10   :  { %v1242_v45 = vld [vmem:[%s1475_s4] sm:$0x3] }
  0x11   :  { %v558_v54 = vrot.slane %v1242_v45, %v557_v47  ;;  %v521_v47 = vmul.f32 %v489_v24, %v489_v24 }
  0x12   :  { %880 = vmatmul.mubr.msk.bf16.vlgmr.msra.gmra.mrb[0].mxu0 %vm167_vm0, %v25_v5 }
  0x13   :  { %883 = vmatprep.mubr.msk.bf16.mxu0 %vm167_vm0, %v1115_v6  ;;  %848 = vmatprep.mubr.msk.f32.mxu1 %vm167_vm0, %v558_v54  ;;  %v519_v6 = vmul.f32 %v487_v50, %v487_v50 }
  0x1a   :  { %884 = vmatmul.mubr.msk.bf16.gmra.mrb[4].mxu0 %vm167_vm0, %v1123_v7 }
  0x1b   :  { %887 = vmatprep.mubr.msk.bf16.mxu0 %vm167_vm0, %v1128_v8 }
  0x22   :  { %888 = vmatmul.mubr.msk.bf16.gmra.mrb[8].mxu0 %vm167_vm0, %v1137_v9 }
  0x23   :  { %891 = vmatprep.mubr.msk.bf16.mxu0 %vm167_vm0, %v1142_v10 }
  0x2a   :  { %892 = vmatmul.mubr.msk.bf16.gmra.mrb[12].mxu0 %vm167_vm0, %v1151_v11 }
  0x2b   :  { %895 = vmatprep.mubr.msk.bf16.mxu0 %vm167_vm0, %v1156_v12 }
  0x32   :  { %896 = vmatmul.mubr.msk.bf16.gmra.mrb[16].mxu0 %vm167_vm0, %v1165_v13 }
  0x33   :  { %899 = vmatprep.mubr.msk.bf16.mxu0 %vm167_vm0, %v1170_v14 }
  0x3a   :  { %900 = vmatmul.mubr.msk.bf16.gmra.mrb[20].mxu0 %vm167_vm0, %v1179_v15 }
  0x3b   :  { %903 = vmatprep.mubr.msk.bf16.mxu0 %vm167_vm0, %v1184_v16 }
  0x42   :  { %904 = vmatmul.mubr.msk.bf16.gmra.mrb[24].mxu0 %vm167_vm0, %v1193_v17 }
  0x43   :  { %907 = vmatprep.mubr.msk.bf16.mxu0 %vm167_vm0, %v1198_v18 }
  0x4a   :  { %908 = vmatmul.mubr.msk.bf16.gmra.mrb[28].mxu0 %vm167_vm0, %v1207_v19 }
  0xe5   :  { %v881_v27 = vpop.f32.mrb[0].mxu0 }
  0xe6   :  { %v385_v31 = vmul.f32 %v881_v27, %v1222_v26  ;;  %v250_v32 = vpop.f32.mrb[1].mxu0 }
  0xe7   :  { %v383_v33 = vmul.f32 %v1222_v26, %v250_v32  ;;  %v882_v34 = vpop.f32.mrb[2].mxu0 }
  0xe8   :  { %v421_v36 = vadd.f32 %v1227_v28, %v385_v31  ;;  %v386_v37 = vmul.f32 %v882_v34, %v1222_v26  ;;  %v253_v38 = vpop.f32.mrb[3].mxu0 }
  0xe9   :  { %v419_v39 = vadd.f32 %v1227_v28, %v383_v33  ;;  %v384_v40 = vmul.f32 %v1222_v26, %v253_v38 }
  0xea   :  { %v422_v42 = vadd.f32 %v1227_v28, %v386_v37  ;;  %v453_v48 = vmul.f32 %v881_v27, %v421_v36 }
  0xeb   :  { %v420_v46 = vadd.f32 %v1227_v28, %v384_v40  ;;  %v451_v51 = vmul.f32 %v419_v39, %v250_v32 }
  0xec   :  { %v454_v49 = vmul.f32 %v882_v34, %v422_v42  ;;  %v921_v34 = vpack.c.bf16 %v520_v20, %v519_v6  ;;  %v524_v6 = vmul.f32 %v492_v55, %v492_v55  ;;  %v496_v55 = vunpack.c.h.bf16 %v1142_v10 }
  0xed   :  { %v452_v52 = vmul.f32 %v420_v46, %v253_v38  ;;  %v885_v53 = vpop.f32.mrb[4].mxu0 }
  0xee   :  { %v919_v56 = vpack.c.bf16 %v454_v49, %v453_v48  ;;  %v389_v57 = vmul.f32 %v885_v53, %v1222_v26  ;;  %v266_v58 = vpop.f32.mrb[5].mxu0  ;;  %v522_v48 = vmul.f32 %v490_v30, %v490_v30 }
  0xef   :  { %v387_v60 = vmul.f32 %v1222_v26, %v266_v58  ;;  %v886_v61 = vpop.f32.mrb[6].mxu0  ;;  %v914_v62 = vpack.c.bf16 %v452_v52, %v451_v51  ;;  %v491_v52 = vunpack.c.l.bf16 %v1128_v8 }
  0xf0   :  { %v425_v63 = vadd.f32 %v1227_v28, %v389_v57  ;;  %v390_v0 = vmul.f32 %v886_v61, %v1222_v26  ;;  %v269_v1 = vpop.f32.mrb[7].mxu0  ;;  %v926_v57 = vpack.c.bf16 %v522_v48, %v521_v47 }
  0xf1   :  { %v423_v2 = vadd.f32 %v1227_v28, %v387_v60  ;;  %v388_v3 = vmul.f32 %v1222_v26, %v269_v1  ;;  %915 = vmatpush1.bf16.xpose.msra.mxu1 %v914_v62 }
  0xf2   :  { %v1256_v4 = vmul.f32 %v885_v53, %v425_v63  ;;  %v426_v5 = vadd.f32 %v1227_v28, %v390_v0  ;;  %918 = vmatprep.subr.msk.bf16.mxu1 %vm1213_vm1, %v916_v59 }
  0xf3   :  { %v455_v21 = vmul.f32 %v423_v2, %v266_v58  ;;  %v424_v22 = vadd.f32 %v1227_v28, %v388_v3 }
  0xf4   :  { %v1262_v23 = vmul.f32 %v886_v61, %v426_v5  ;;  %v523_v5 = vmul.f32 %v491_v52, %v491_v52 }
  0xf5   :  { %v456_v27 = vmul.f32 %v424_v22, %v269_v1  ;;  %v889_v29 = vpop.f32.mrb[8].mxu0 }
  0xf6   :  { %v929_v31 = vpack.c.bf16 %v1262_v23, %v1256_v4  ;;  %v393_v32 = vmul.f32 %v889_v29, %v1222_v26  ;;  %v282_v33 = vpop.f32.mrb[9].mxu0  ;;  %v493_v23 = vunpack.c.l.bf16 %v1137_v9 }
  0xf7   :  { %v924_v36 = vpack.c.bf16 %v456_v27, %v455_v21  ;;  %v391_v37 = vmul.f32 %v1222_v26, %v282_v33  ;;  %v890_v38 = vpop.f32.mrb[10].mxu0 }
  0xf8   :  { %v429_v39 = vadd.f32 %v1227_v28, %v393_v32  ;;  %v394_v40 = vmul.f32 %v890_v38, %v1222_v26  ;;  %v285_v42 = vpop.f32.mrb[11].mxu0  ;;  %v931_v32 = vpack.c.bf16 %v524_v6, %v523_v5  ;;  %v528_v6 = vmul.f32 %v496_v55, %v496_v55 }
  0xf9   :  { %920 = vmatpush1.bf16.xpose.msra.mxu1 %v919_v56  ;;  %v427_v43 = vadd.f32 %v1227_v28, %v391_v37  ;;  %v392_v7 = vmul.f32 %v1222_v26, %v285_v42 }
  0xfa   :  { %v1274_v44 = vmul.f32 %v889_v29, %v429_v39  ;;  %v430_v46 = vadd.f32 %v1227_v28, %v394_v40  ;;  %923 = vmatprep.subr.msk.bf16.mxu1 %vm1213_vm1, %v921_v34  ;;  %v494_v29 = vunpack.c.h.bf16 %v1137_v9 }
  0xfb   :  { %v1279_v49 = vmul.f32 %v427_v43, %v282_v33  ;;  %v428_v50 = vadd.f32 %v1227_v28, %v392_v7  ;;  %v525_v7 = vmul.f32 %v493_v23, %v493_v23 }
  0xfc   :  { %v1282_v51 = vmul.f32 %v890_v38, %v430_v46  ;;  %v526_v46 = vmul.f32 %v494_v29, %v494_v29 }
  0xfd   :  { %v1285_v53 = vmul.f32 %v428_v50, %v285_v42  ;;  %v893_v54 = vpop.f32.mrb[12].mxu0 }
  0xfe   :  { %v939_v56 = vpack.c.bf16 %v1282_v51, %v1274_v44  ;;  %v397_v58 = vmul.f32 %v893_v54, %v1222_v26  ;;  %v298_v59 = vpop.f32.mrb[13].mxu0  ;;  %v499_v44 = vunpack.c.l.bf16 %v1156_v12 }
  0xff   :  { %v934_v60 = vpack.c.bf16 %v1285_v53, %v1279_v49  ;;  %v395_v61 = vmul.f32 %v1222_v26, %v298_v59  ;;  %v894_v62 = vpop.f32.mrb[14].mxu0 }
 0x100   :  { %v433_v63 = vadd.f32 %v1227_v28, %v397_v58  ;;  %v398_v0 = vmul.f32 %v894_v62, %v1222_v26  ;;  %v301_v1 = vpop.f32.mrb[15].mxu0 }
 0x101   :  { %925 = vmatpush1.bf16.xpose.msra.mxu1 %v924_v36  ;;  %v431_v8 = vadd.f32 %v1227_v28, %v395_v61  ;;  %v396_v2 = vmul.f32 %v1222_v26, %v301_v1 }
 0x102   :  { %928 = vmatprep.subr.msk.bf16.mxu1 %vm1213_vm1, %v926_v57  ;;  %v1300_v3 = vmul.f32 %v893_v54, %v433_v63  ;;  %v434_v4 = vadd.f32 %v1227_v28, %v398_v0  ;;  %v936_v57 = vpack.c.bf16 %v526_v46, %v525_v7 }
 0x103   :  { %v1303_v20 = vmul.f32 %v431_v8, %v298_v59  ;;  %v432_v21 = vadd.f32 %v1227_v28, %v396_v2 }
 0x104   :  { %v1306_v22 = vmul.f32 %v894_v62, %v434_v4 }
 0x105   :  { %v1309_v24 = vmul.f32 %v432_v21, %v301_v1  ;;  %v897_v27 = vpop.f32.mrb[16].mxu0 }
 0x106   :  { %v949_v30 = vpack.c.bf16 %v1306_v22, %v1300_v3  ;;  %v401_v33 = vmul.f32 %v897_v27, %v1222_v26  ;;  %v314_v34 = vpop.f32.mrb[17].mxu0  ;;  %v505_v22 = vunpack.c.l.bf16 %v1179_v15 }
 0x107   :  { %v944_v36 = vpack.c.bf16 %v1309_v24, %v1303_v20  ;;  %v399_v37 = vmul.f32 %v1222_v26, %v314_v34  ;;  %v898_v38 = vpop.f32.mrb[18].mxu0  ;;  %v501_v20 = vunpack.c.l.bf16 %v1165_v13  ;;  %v502_v24 = vunpack.c.h.bf16 %v1165_v13 }
 0x108   :  { %v437_v39 = vadd.f32 %v1227_v28, %v401_v33  ;;  %v402_v40 = vmul.f32 %v898_v38, %v1222_v26  ;;  %v317_v42 = vpop.f32.mrb[19].mxu0 }
 0x109   :  { %930 = vmatpush1.bf16.xpose.msra.mxu1 %v929_v31  ;;  %v435_v9 = vadd.f32 %v1227_v28, %v399_v37  ;;  %v400_v43 = vmul.f32 %v1222_v26, %v317_v42  ;;  %v495_v31 = vunpack.c.l.bf16 %v1142_v10  ;;  %v498_v37 = vunpack.c.h.bf16 %v1151_v11 }
 0x10a   :  { %933 = vmatprep.subr.msk.bf16.mxu1 %vm1213_vm1, %v931_v32  ;;  %v1324_v47 = vmul.f32 %v897_v27, %v437_v39  ;;  %v438_v48 = vadd.f32 %v1227_v28, %v402_v40 }
 0x10b   :  { %v1327_v49 = vmul.f32 %v435_v9, %v314_v34  ;;  %v436_v50 = vadd.f32 %v1227_v28, %v400_v43  ;;  %v527_v5 = vmul.f32 %v495_v31, %v495_v31  ;;  %v530_v55 = vmul.f32 %v498_v37, %v498_v37 }
 0x10c   :  { %v1330_v52 = vmul.f32 %v898_v38, %v438_v48 }
 0x10d   :  { %v1333_v53 = vmul.f32 %v436_v50, %v317_v42  ;;  %v901_v54 = vpop.f32.mrb[20].mxu0  ;;  %v941_v38 = vpack.c.bf16 %v528_v6, %v527_v5 }
 0x10e   :  { %v959_v58 = vpack.c.bf16 %v1330_v52, %v1324_v47  ;;  %v405_v59 = vmul.f32 %v901_v54, %v1222_v26  ;;  %v330_v61 = vpop.f32.mrb[21].mxu0  ;;  %v509_v52 = vunpack.c.l.bf16 %v1193_v17 }
 0x10f   :  { %v954_v62 = vpack.c.bf16 %v1333_v53, %v1327_v49  ;;  %v403_v63 = vmul.f32 %v1222_v26, %v330_v61  ;;  %v902_v0 = vpop.f32.mrb[22].mxu0  ;;  %v507_v53 = vunpack.c.l.bf16 %v1184_v16 }
 0x110   :  { %v441_v1 = vadd.f32 %v1227_v28, %v405_v59  ;;  %v406_v8 = vmul.f32 %v902_v0, %v1222_v26  ;;  %v333_v2 = vpop.f32.mrb[23].mxu0 }
 0x111   :  { %935 = vmatpush1.bf16.xpose.msra.mxu1 %v934_v60  ;;  %v439_v10 = vadd.f32 %v1227_v28, %v403_v63  ;;  %v404_v4 = vmul.f32 %v1222_v26, %v333_v2  ;;  %v497_v60 = vunpack.c.l.bf16 %v1151_v11 }
 0x112   :  { %938 = vmatprep.subr.msk.bf16.mxu1 %vm1213_vm1, %v936_v57  ;;  %v1348_v21 = vmul.f32 %v901_v54, %v441_v1  ;;  %v442_v23 = vadd.f32 %v1227_v28, %v406_v8  ;;  %v500_v1 = vunpack.c.h.bf16 %v1156_v12 }
 0x113   :  { %v1351_v27 = vmul.f32 %v439_v10, %v330_v61  ;;  %v440_v29 = vadd.f32 %v1227_v28, %v404_v4  ;;  %v529_v54 = vmul.f32 %v497_v60, %v497_v60 }
 0x114   :  { %v1354_v32 = vmul.f32 %v902_v0, %v442_v23 }
 0x115   :  { %v1357_v33 = vmul.f32 %v440_v29, %v333_v2  ;;  %v905_v34 = vpop.f32.mrb[24].mxu0  ;;  %v946_v8 = vpack.c.bf16 %v530_v55, %v529_v54  ;;  %v534_v54 = vmul.f32 %v502_v24, %v502_v24  ;;  %v504_v55 = vunpack.c.h.bf16 %v1170_v14 }
 0x116   :  { %v969_v39 = vpack.c.bf16 %v1354_v32, %v1348_v21  ;;  %v409_v40 = vmul.f32 %v905_v34, %v1222_v26  ;;  %v346_v42 = vpop.f32.mrb[25].mxu0  ;;  %v514_v21 = vunpack.c.h.bf16 %v1207_v19 }
 0x117   :  { %v964_v9 = vpack.c.bf16 %v1357_v33, %v1351_v27  ;;  %v407_v43 = vmul.f32 %v1222_v26, %v346_v42  ;;  %v906_v7 = vpop.f32.mrb[26].mxu0  ;;  %v536_v3 = vmul.f32 %v504_v55, %v504_v55  ;;  %v511_v33 = vunpack.c.l.bf16 %v1198_v18 }
 0x118   :  { %v445_v46 = vadd.f32 %v1227_v28, %v409_v40  ;;  %v410_v48 = vmul.f32 %v906_v7, %v1222_v26  ;;  %v349_v50 = vpop.f32.mrb[27].mxu0  ;;  %v532_v40 = vmul.f32 %v500_v1, %v500_v1  ;;  %v513_v1 = vunpack.c.l.bf16 %v1207_v19 }
 0x119   :  { %940 = vmatpush1.bf16.xpose.msra.mxu1 %v939_v56  ;;  %v443_v11 = vadd.f32 %v1227_v28, %v407_v43  ;;  %v408_v31 = vmul.f32 %v1222_v26, %v349_v50 }
 0x11a   :  { %943 = vmatprep.subr.msk.bf16.mxu1 %vm1213_vm1, %v941_v38  ;;  %v1375_v57 = vmul.f32 %v905_v34, %v445_v46  ;;  %v446_v59 = vadd.f32 %v1227_v28, %v410_v48  ;;  %v531_v38 = vmul.f32 %v499_v44, %v499_v44 }
 0x11b   :  { %v1378_v61 = vmul.f32 %v443_v11, %v346_v42  ;;  %v444_v63 = vadd.f32 %v1227_v28, %v408_v31  ;;  %v533_v31 = vmul.f32 %v501_v20, %v501_v20 }
 0x11c   :  { %v1381_v0 = vmul.f32 %v906_v7, %v446_v59 }
 0x11d   :  { %v1384_v51 = vmul.f32 %v444_v63, %v349_v50  ;;  %v909_v56 = vpop.f32.mrb[28].mxu0  ;;  %v956_v59 = vpack.c.bf16 %v534_v54, %v533_v31 }
 0x11e   :  { %v979_v2 = vpack.c.bf16 %v1381_v0, %v1375_v57  ;;  %v413_v10 = vmul.f32 %v909_v56, %v1222_v26  ;;  %v362_v4 = vpop.f32.mrb[29].mxu0  ;;  %v549_v57 = vstv %s1471_s0  ;;  %s1062_s0 = smov [#allocation3]  }
 0x11f   :  { %v974_v5 = vpack.c.bf16 %v1384_v51, %v1378_v61  ;;  %v411_v6 = vmul.f32 %v1222_v26, %v362_v4  ;;  %v910_v23 = vpop.f32.mrb[30].mxu0  ;;  %s770_s11 = sshll.u32 %s1062_s0, 4  ;;  %s771_s11 = int_to_ptr.vmem [resolvable:$true] %s770_s11 }
 0x120   :  { %v449_v29 = vadd.f32 %v1227_v28, %v413_v10  ;;  %v414_v60 = vmul.f32 %v910_v23, %v1222_v26  ;;  %v365_v34 = vpop.f32.mrb[31].mxu0  ;;  %v553_v10 = vsub.s32 0, %v1236_v41  ;;  %s1037_s12 = scalar_lea.vmem %s771_s11, 32  ;;  %p1042_p1 = scmp.lt.s32.totalorder %s771_s11, %s771_s11 }
 0x121   :  { %945 = vmatpush1.bf16.xpose.msra.mxu1 %v944_v36  ;;  %v447_v12 = vadd.f32 %v1227_v28, %v411_v6  ;;  %v412_v37 = vmul.f32 %v1222_v26, %v365_v34  ;;  %v951_v36 = vpack.c.bf16 %v532_v40, %v531_v38  ;;  %p1038_p0 = scmp.ne.s32.totalorder %s771_s11, %s1037_s12  ;;  %p1043_p2 = scmp.lt.s32.totalorder %s1037_s12, %s1037_s12 }
 0x122   :  { %948 = vmatprep.subr.msk.bf16.mxu1 %vm1213_vm1, %v946_v8  ;;  %v481_v42 = vmul.f32 %v909_v56, %v449_v29  ;;  %v450_v43 = vadd.f32 %v1227_v28, %v414_v60  ;;  %v554_v19 = vrot.slane %v1242_v45, %v553_v10  ;;  %v1061_v45 = vmov 1966171168  }
 0x123   :  { %v479_v7 = vmul.f32 %v447_v12, %v362_v4  ;;  %v448_v46 = vadd.f32 %v1227_v28, %v412_v37  ;;  %v503_v28 = vunpack.c.l.bf16 %v1170_v14  ;;  %v537_v14 = vmul.f32 %v505_v22, %v505_v22  ;;  %p1044_p3 = por %p1043_p2, %p1042_p1 }
 0x124   :  { %v482_v48 = vmul.f32 %v910_v23, %v450_v43  ;;  %v745_v12 = vunpack.c.l.s4 %v1061_v45 }
 0x125   :  { %v480_v50 = vmul.f32 %v448_v46, %v365_v34  ;;  %v535_v13 = vmul.f32 %v503_v28, %v503_v28  ;;  %p1045_p4 = pnand %p1044_p3, %p1038_p0 }
 0x126   :  { %v989_v11 = vpack.c.bf16 %v482_v48, %v481_v42  ;;  %v746_v37 = vunpack.c.0.s8 %v745_v12 }
 0x127   :  { %v984_v26 = vpack.c.bf16 %v480_v50, %v479_v7  ;;  %v961_v61 = vpack.c.bf16 %v536_v3, %v535_v13 }
 0x128   :  { %v749_v40 = vsub.s32 %v746_v37, %v1236_v41 }
 0x129   :  { %950 = vmatpush1.bf16.xpose.msra.mxu1 %v949_v30  ;;  %v506_v30 = vunpack.c.h.bf16 %v1179_v15  ;;  %v539_v15 = vmul.f32 %v507_v53, %v507_v53 }
 0x12a   :  { %953 = vmatprep.subr.msk.bf16.mxu1 %vm1213_vm1, %v951_v36 }
 0x12b   :  { %v538_v49 = vmul.f32 %v506_v30, %v506_v30 }
 0x12d   :  { %v966_v63 = vpack.c.bf16 %v538_v49, %v537_v14 }
 0x131   :  { %955 = vmatpush1.bf16.xpose.msra.mxu1 %v954_v62  ;;  %v508_v62 = vunpack.c.h.bf16 %v1184_v16  ;;  %v541_v16 = vmul.f32 %v509_v52, %v509_v52 }
 0x132   :  { %958 = vmatprep.subr.msk.bf16.mxu1 %vm1213_vm1, %v956_v59 }
 0x133   :  { %v540_v47 = vmul.f32 %v508_v62, %v508_v62 }
 0x135   :  { %v971_v44 = vpack.c.bf16 %v540_v47, %v539_v15 }
 0x139   :  { %960 = vmatpush1.bf16.xpose.msra.mxu1 %v959_v58  ;;  %v510_v58 = vunpack.c.h.bf16 %v1193_v17  ;;  %v543_v17 = vmul.f32 %v511_v33, %v511_v33 }
 0x13a   :  { %963 = vmatprep.subr.msk.bf16.mxu1 %vm1213_vm1, %v961_v61 }
 0x13b   :  { %v542_v27 = vmul.f32 %v510_v58, %v510_v58 }
 0x13d   :  { %v976_v51 = vpack.c.bf16 %v542_v27, %v541_v16 }
 0x141   :  { %965 = vmatpush1.bf16.xpose.msra.mxu1 %v964_v9  ;;  %v512_v9 = vunpack.c.h.bf16 %v1198_v18  ;;  %v545_v18 = vmul.f32 %v513_v1, %v513_v1 }
 0x142   :  { %968 = vmatprep.subr.msk.bf16.mxu1 %vm1213_vm1, %v966_v63 }
 0x143   :  { %v544_v56 = vmul.f32 %v512_v9, %v512_v9 }
 0x145   :  { %v981_v32 = vpack.c.bf16 %v544_v56, %v543_v17 }
 0x149   :  { %970 = vmatpush1.bf16.xpose.msra.mxu1 %v969_v39  ;;  %v546_v39 = vmul.f32 %v514_v21, %v514_v21 }
 0x14a   :  { %973 = vmatprep.subr.msk.bf16.mxu1 %vm1213_vm1, %v971_v44 }
 0x14b   :  { %v986_v8 = vpack.c.bf16 %v546_v39, %v545_v18 }
 0x151   :  { %975 = vmatpush1.bf16.xpose.msra.mxu1 %v974_v5 }
 0x152   :  { %978 = vmatprep.subr.msk.bf16.mxu1 %vm1213_vm1, %v976_v51 }
 0x159   :  { %980 = vmatpush1.bf16.xpose.msra.mxu1 %v979_v2 }
 0x15a   :  { %983 = vmatprep.subr.msk.bf16.mxu1 %vm1213_vm1, %v981_v32 }
 0x161   :  { %985 = vmatpush1.bf16.xpose.msra.mxu1 %v984_v26 }
 0x162   :  { %988 = vmatprep.subr.msk.bf16.mxu1 %vm1213_vm1, %v986_v8 }
 0x169   :  { %990 = vmatpush1.bf16.xpose.msra.mxu1 %v989_v11 }
 0x170   :  { %723 = vmatmul.mubr.f32.vlgmr.msra.gmra.mrb[0].mxu1 %v554_v19 }
 0x243   :  { %v724_v0 = vpop.f32.mrb[0].mxu1 }
 0x244   :  { %v725_v2 = vadd.f32 %v724_v0, %v549_v57  ;;  %v726_v4 = vpop.f32.mrb[1].mxu1 }
 0x245   :  { %v727_v5 = vadd.f32 %v726_v4, %v549_v57 }
 0x246   :  { %v849_v6 = vmul.f32 -1.442695, %v725_v2 }
 0x247   :  { %v850_v23 = vmul.f32 -1.442695, %v727_v5 }
 0x248   :  { %1029 = vpow2.f32 %v849_v6 }
 0x249   :  { %1031 = vpow2.f32 %v850_v23 }
 0x252   :  { %v1030_v25 = vpop.eup %1029 }
 0x253   :  { %v1032_v29 = vpop.eup %1031  ;;  %v735_v60 = vadd.f32 1.0, %v1030_v25 }
 0x254   :  { %v736_v34 = vadd.f32 1.0, %v1032_v29 }
 0x255   :  { %1033 = vrcp.f32 %v735_v60 }
 0x256   :  { %1035 = vrcp.f32 %v736_v34 }
 0x25f   :  { %v1034_v38 = vpop.eup %1033 }
 0x260   :  { %v1036_v42 = vpop.eup %1035 }
 0x261   :  { %v743_v43 = vcombine.low %v1034_v38, %v1036_v42 }
 0x263   :  { %v750_v7 = vrot.slane %v743_v43, %v749_v40 }
 0x265   :  { %v757_v46 = vrot.slane %v750_v7, %v749_v40 }
 0x267   :  { %763 = vst.msk [vmem:[#allocation3] sm:$0x3] %vm761_vm2, %v757_v46 }
 0x268   :  { %1048 = shalt.err (!%p1045_p4)
}
 0x269   :  { %s1049_s15 = scalar_lea.hbm %s1476_s5, 32 }
 0x26a   :  { %p1050_p5 = scmp.ne.s32.totalorder %s1476_s5, %s1049_s15  ;;  %p1053_p6 = scmp.lt.u32.totalorder %s1049_s15, %s1476_s5 }
 0x26c   :  { %p1055_p7 = pnand %p1053_p6, %p1050_p5 }
 0x26e   :  { %1058 = shalt.err (!%p1055_p7)
}
 0x26f   :  { %773 = dma.vmem_to_hbm [thread:$0]  %s771_s11, 32, %s1476_s5, [#allocation4]  }
 0x270   :  { %1059 = dma.done.wait [#allocation4], 32  }
 0x271   :  { %1060 = vsyncadd [#allocation4], 4294967264 }
 0x272   :  { %777 = vsyncpa [#allocation4], 1 }

</bundles_post_ra>
